<compile_context>
chip_gen: v7x
topology: tpu7x:2x2x1
jax: 0.10.0
libtpu: 0.0.40
codegen_flags: <defaults>
</compile_context>

<pallas_src>
import functools

import jax
import jax.numpy as jnp
from jax.experimental import pallas as pl
from jax.experimental.pallas import tpu as pltpu

LANE = 128
ROW_ALIGN = 8          # f32 sublane tile
MAX_BLOCK_ROWS = 4096  # (4096,128) f32 block = 2 MiB; 2 inputs double-buffered = 8 MiB


def _round_up(x, m):
    return (x + m - 1) // m * m


def _focal_loss_kernel(x_ref, t_ref, out_ref, *, alpha, gamma, block_rows, n_rows,
                       mask_last):
    p = x_ref[...]                       # (block_rows, 128) f32 probabilities
    is_pos = t_ref[...] > 0.5            # targets are exactly 0/1

    # q = p if target==1 else 1-p;  BCE = -clamp(log q, -100);  pt = exp(-BCE) == q.
    q = jnp.where(is_pos, p, 1.0 - p)
    bce = -jnp.maximum(jnp.log(q), -100.0)
    at = jnp.where(is_pos, 1.0 - alpha, alpha)
    focal = (1.0 - q) ** gamma           # integer gamma -> lax.integer_pow (no exp/log)
    f_loss = at * focal * bce

    if not mask_last:
        # Every block is fully valid (rows % block_rows == 0): unmasked fast path.
        out_ref[...] = jnp.sum(f_loss, axis=0, keepdims=True)
    else:
        pid = pl.program_id(0)
        last = pl.num_programs(0) - 1

        @pl.when(pid < last)
        def _():
            out_ref[...] = jnp.sum(f_loss, axis=0, keepdims=True)

        @pl.when(pid == last)
        def _():
            # Only the last (partial) block reads garbage rows beyond the array;
            # zero them before the reduce.  Lane-tail padding (if any) was built
            # with x=0, t=0 -> loss exactly 0, so rows-only masking suffices.
            row = jax.lax.broadcasted_iota(jnp.int32, f_loss.shape, 0)
            valid_rows = n_rows - pid * block_rows
            out_ref[...] = jnp.sum(jnp.where(row < valid_rows, f_loss, 0.0),
                                   axis=0, keepdims=True)


def weighted_focal_loss(inputs, targets, alpha=0.25, gamma=2):
    """inputs, targets: same-shape arrays; probs in [0,1], binary 0/1 targets."""
    assert inputs.shape == targets.shape
    x = inputs.reshape(-1).astype(jnp.float32)     # reshape/astype are no-ops for 1-D f32
    t = targets.reshape(-1).astype(jnp.float32)    # keep native f32: no extra HBM pass
    n = x.shape[0]

    g = float(gamma)
    gamma_static = int(g) if g.is_integer() else g  # keep integer gamma static

    # Lane alignment: (rows,128) reshape is a free bitcast when n % 128 == 0 (no copy).
    rem = n % LANE
    if rem:
        x = jnp.pad(x, (0, LANE - rem))   # pad value 0 with t=0 -> zero loss contribution
        t = jnp.pad(t, (0, LANE - rem))
    rows = x.shape[0] // LANE
    x = x.reshape(rows, LANE)
    t = t.reshape(rows, LANE)

    # Aim for >= 2 grid blocks once there is enough work (v7x megacore), cap block size.
    target_rows = pl.cdiv(rows, 2) if rows > 2 * ROW_ALIGN else rows
    block_rows = min(MAX_BLOCK_ROWS, _round_up(target_rows, ROW_ALIGN))
    num_blocks = pl.cdiv(rows, block_rows)
    mask_last = (rows % block_rows) != 0   # only then does the last block see garbage

    kernel = functools.partial(
        _focal_loss_kernel,
        alpha=float(alpha),
        gamma=gamma_static,
        block_rows=block_rows,
        n_rows=rows,
        mask_last=mask_last,
    )

    blk = pl.BlockSpec((block_rows, LANE), lambda i: (i, 0))

    partials = pl.pallas_call(
        kernel,
        out_shape=jax.ShapeDtypeStruct((num_blocks, LANE), jnp.float32),
        grid_spec=pltpu.PrefetchScalarGridSpec(
            num_scalar_prefetch=0,
            grid=(num_blocks,),
            in_specs=[blk, blk],
            out_specs=pl.BlockSpec((1, LANE), lambda i: (i, 0)),
        ),
        compiler_params=pltpu.CompilerParams(
            dimension_semantics=("parallel",),   # independent blocks: megacore-friendly
        ),
        cost_estimate=pl.CostEstimate(
            flops=10 * n, transcendentals=n, bytes_accessed=8 * n),
    )(x, t)

    return jnp.sum(partials) / jnp.float32(n)


def _reference(inputs, targets, alpha=0.25, gamma=2):
    """Plain-JAX mirror of the PyTorch forward for validation."""
    p = inputs.astype(jnp.float32)
    t = targets.astype(jnp.float32)
    log_p = jnp.maximum(jnp.log(p), -100.0)
    log_1p = jnp.maximum(jnp.log(1.0 - p), -100.0)
    bce = -(t * log_p + (1.0 - t) * log_1p)
    alpha_vec = jnp.array([alpha, 1.0 - alpha], jnp.float32)
    at = alpha_vec[targets.astype(jnp.int32)]
    pt = jnp.exp(-bce)
    return jnp.mean(at * (1.0 - pt) ** gamma * bce)


if __name__ == "__main__":
    key = jax.random.PRNGKey(0)

    # Three sizes to cover all code paths:
    #   1000  : ragged (lane-pad path), single block
    #   25600 : lane-aligned (zero-copy), 2 blocks, partial last block -> in-kernel mask
    #   32768 : lane-aligned (zero-copy), 2 full blocks -> unmasked fast path
    ok = True
    for N in (1000, 25600, 32768):
        k1, k2 = jax.random.split(jax.random.fold_in(key, N))
        inputs = jax.random.uniform(k1, (N,), jnp.float32, minval=1e-4, maxval=1.0 - 1e-4)
        targets = jax.random.bernoulli(k2, 0.3, (N,)).astype(jnp.float32)
        # exercise the log-clamp (-100) path with exact-0 / exact-1 probabilities
        inputs = inputs.at[0].set(0.0).at[1].set(1.0)
        targets = targets.at[0].set(1.0).at[1].set(0.0)

        loss = jax.block_until_ready(
            weighted_focal_loss(inputs, targets, alpha=0.25, gamma=2))
        ref = _reference(inputs, targets, alpha=0.25, gamma=2)
        ok = ok and bool(jnp.allclose(loss, ref, rtol=1e-5, atol=1e-6))
        assert ok, (N, loss, ref)

    print("KERNEL_OK")
</pallas_src>

<mosaic_0001>
module attributes {stable_mosaic.version = 11 : i64} {
  func.func @_focal_loss_kernel(%arg0: i32, %arg1: memref<8x128xf32, #tpu.memory_space<vmem>>, %arg2: memref<8x128xf32, #tpu.memory_space<vmem>>, %arg3: memref<1x128xf32, #tpu.memory_space<vmem>>) attributes {dimension_semantics = [#tpu.dimension_semantics<parallel>], iteration_bounds = array<i64: 1>, scalar_prefetch = 0 : i64, scratch_operands = 0 : i64, tpu.core_type = #tpu.core_type<tc>, window_params = [{transform_indices = @transform_0, window_bounds = array<i64: 8, 128>}, {transform_indices = @transform_1, window_bounds = array<i64: 8, 128>}, {transform_indices = @transform_2, window_bounds = array<i64: 1, 128>}]} {
    %c0 = arith.constant 0 : index
    %c0_0 = arith.constant 0 : index
    %0 = vector.load %arg1[%c0, %c0_0] : memref<8x128xf32, #tpu.memory_space<vmem>>, vector<8x128xf32>
    %c0_1 = arith.constant 0 : index
    %c0_2 = arith.constant 0 : index
    %1 = vector.load %arg2[%c0_1, %c0_2] : memref<8x128xf32, #tpu.memory_space<vmem>>, vector<8x128xf32>
    %cst = arith.constant 5.000000e-01 : f32
    %2 = vector.broadcast %cst : f32 to vector<8x128xf32>
    %3 = arith.cmpf ogt, %1, %2 : vector<8x128xf32>
    %cst_3 = arith.constant 1.000000e+00 : f32
    %4 = vector.broadcast %cst_3 : f32 to vector<8x128xf32>
    %5 = arith.subf %4, %0 : vector<8x128xf32>
    %6 = arith.select %3, %0, %5 : vector<8x128xi1>, vector<8x128xf32>
    %7 = math.log %6 : vector<8x128xf32>
    %cst_4 = arith.constant -1.000000e+02 : f32
    %8 = vector.broadcast %cst_4 : f32 to vector<8x128xf32>
    %9 = arith.maximumf %7, %8 : vector<8x128xf32>
    %cst_5 = arith.constant 0.000000e+00 : f32
    %10 = vector.broadcast %cst_5 : f32 to vector<8x128xf32>
    %11 = arith.subf %10, %9 : vector<8x128xf32>
    %cst_6 = arith.constant 7.500000e-01 : f32
    %cst_7 = arith.constant 2.500000e-01 : f32
    %12 = vector.broadcast %cst_6 : f32 to vector<8x128xf32>
    %13 = vector.broadcast %cst_7 : f32 to vector<8x128xf32>
    %14 = arith.select %3, %12, %13 : vector<8x128xi1>, vector<8x128xf32>
    %cst_8 = arith.constant 1.000000e+00 : f32
    %15 = vector.broadcast %cst_8 : f32 to vector<8x128xf32>
    %16 = arith.subf %15, %6 : vector<8x128xf32>
    %17 = arith.mulf %16, %16 : vector<8x128xf32>
    %18 = arith.mulf %14, %17 : vector<8x128xf32>
    %19 = arith.mulf %18, %11 : vector<8x128xf32>
    %cst_9 = arith.constant dense<0.000000e+00> : vector<128xf32>
    %20 = vector.multi_reduction <add>, %19, %cst_9 [0] : vector<8x128xf32> to vector<128xf32>
    %21 = vector.shape_cast %20 : vector<128xf32> to vector<1x128xf32>
    %c0_10 = arith.constant 0 : index
    %c0_11 = arith.constant 0 : index
    %22 = vector.load %arg3[%c0_10, %c0_11] : memref<1x128xf32, #tpu.memory_space<vmem>>, vector<1x128xf32>
    tpu.vector_store %arg3[%c0_10, %c0_11], %21 {strides = array<i32>} : memref<1x128xf32, #tpu.memory_space<vmem>>, vector<1x128xf32>,
    return
  }
  func.func @transform_0(%arg0: i32) -> (i32, i32) {
    %c0_i32 = arith.constant 0 : i32
    %c0_i32_0 = arith.constant 0 : i32
    return %arg0, %c0_i32 : i32, i32
  }
  func.func @transform_1(%arg0: i32) -> (i32, i32) {
    %c0_i32 = arith.constant 0 : i32
    %c0_i32_0 = arith.constant 0 : i32
    return %arg0, %c0_i32 : i32, i32
  }
  func.func @transform_2(%arg0: i32) -> (i32, i32) {
    %c0_i32 = arith.constant 0 : i32
    %c0_i32_0 = arith.constant 0 : i32
    return %arg0, %c0_i32 : i32, i32
  }
}

</mosaic_0001>

<bundles_post_ra>
// kernel: tpu_custom_call.1
= control target key start
LH: loop header
LB: loop body
LE: loop exit
PB: predicated region body
PF: predicated region fallthrough
CT: control target
= control target key end

     0   :  { %7 = vsyncpa [#allocation3], 0  ;;  %s206_s0 = inlined_call_operand.hbm [shape: f32[8,128], index: 0, kind: input, shape index: {}]   ;;  %s207_s1 = inlined_call_operand.hbm [shape: f32[8,128], index: 1, kind: input, shape index: {}]   ;;  %s208_s2 = inlined_call_operand.hbm [shape: f32[1,128], index: 2, kind: output, shape index: {}]  }
   0x1   :  { %8 = vsyncpa [#allocation6], 0 }
   0x2   :  { %9 = vsyncpa [#allocation4], 0  ;;  %s151_s9 = smov [#allocation2]   ;;  %s152_s11 = smov [#allocation5]  }
   0x3   :  { %s16_s10 = sshll.u32 %s151_s9, 4  ;;  %s26_s12 = sshll.u32 %s152_s11, 4  ;;  %s17_s10 = int_to_ptr.vmem [resolvable:$true] %s16_s10  ;;  %s27_s12 = int_to_ptr.vmem [resolvable:$true] %s26_s12 }
   0x4   :  { %s79_s15 = scalar_lea.hbm %s206_s0, 128 }
   0x5   :  { %p80_p0 = scmp.ne.s32.totalorder %s206_s0, %s79_s15  ;;  %p83_p1 = scmp.lt.u32.totalorder %s79_s15, %s206_s0 }
   0x7   :  { %p85_p2 = pnand %p83_p1, %p80_p0 }
   0x9   :  { %88 = shalt.err (!%p85_p2)
}
   0xa   :  { %s89_s20 = scalar_lea.vmem %s17_s10, 128  ;;  %p94_p4 = scmp.lt.s32.totalorder %s17_s10, %s17_s10 }
   0xb   :  { %p90_p3 = scmp.ne.s32.totalorder %s17_s10, %s89_s20  ;;  %p95_p5 = scmp.lt.s32.totalorder %s89_s20, %s89_s20 }
   0xd   :  { %p96_p6 = por %p95_p5, %p94_p4 }
   0xf   :  { %p97_p7 = pnand %p96_p6, %p90_p3 }
  0x11   :  { %100 = shalt.err (!%p97_p7)
}
  0x12   :  { %19 = dma.hbm_to_vmem [thread:$0]  %s206_s0, 128, %s17_s10, [#allocation3]  }
  0x13   :  { %s101_s25 = scalar_lea.hbm %s207_s1, 128 }
  0x14   :  { %p102_p8 = scmp.ne.s32.totalorder %s207_s1, %s101_s25  ;;  %p105_p9 = scmp.lt.u32.totalorder %s101_s25, %s207_s1 }
  0x16   :  { %p107_p10 = pnand %p105_p9, %p102_p8 }
  0x18   :  { %110 = shalt.err (!%p107_p10)
}
  0x19   :  { %s111_s30 = scalar_lea.vmem %s27_s12, 128  ;;  %p116_p12 = scmp.lt.s32.totalorder %s27_s12, %s27_s12 }
  0x1a   :  { %p112_p11 = scmp.ne.s32.totalorder %s27_s12, %s111_s30  ;;  %p117_p13 = scmp.lt.s32.totalorder %s111_s30, %s111_s30 }
  0x1c   :  { %p118_p0 = por %p117_p13, %p116_p12 }
  0x1e   :  { %p119_p1 = pnand %p118_p0, %p112_p11 }
  0x20   :  { %122 = shalt.err (!%p119_p1)
}
  0x21   :  { %29 = dma.hbm_to_vmem [thread:$0]  %s207_s1, 128, %s27_s12, [#allocation6]  }
  0x22   :  { %145 = dma.done.wait [#allocation3], 128  }
  0x23   :  { %146 = vsyncadd [#allocation3], 4294967168 }
  0x24   :  { %147 = dma.done.wait [#allocation6], 128  }
  0x25   :  { %148 = vsyncadd [#allocation6], 4294967168  ;;  %v36_v0 = vld [vmem:[#allocation2] sm:$0xff]  ;;  %v37_v1 = vld [vmem:[#allocation5] sm:$0xff]  ;;  %v153_v7 = vmov 0.25   ;;  %s154_s1 = smov [#allocation7]  }
  0x26   :  { %vm38_vm0 = vcmp.gt.f32.partialorder %v37_v1, 0.5  ;;  %v39_v2 = vsub.f32 1.0, %v36_v0  ;;  %s63_s4 = sshll.u32 %s154_s1, 4  ;;  %s64_s4 = int_to_ptr.vmem [resolvable:$true] %s63_s4 }
  0x27   :  { %v45_v8 = vsel %vm38_vm0, 0.75, %v153_v7  ;;  %s123_s5 = scalar_lea.vmem %s64_s4, 16  ;;  %s127_s6 = scalar_lea.vmem %s64_s4, 32 }
  0x28   :  { %v40_v3 = vsel %vm38_vm0, %v36_v0, %v39_v2  ;;  %p124_p2 = scmp.ne.s32.totalorder %s64_s4, %s123_s5  ;;  %p128_p3 = scmp.lt.s32.totalorder %s64_s4, %s64_s4 }
  0x29   :  { %77 = vlog2.f32 %v40_v3  ;;  %v46_v4 = vsub.f32 1.0, %v40_v3  ;;  %p129_p4 = scmp.lt.s32.totalorder %s127_s6, %s123_s5 }
  0x2b   :  { %v47_v5 = vmul.f32 %v46_v4, %v46_v4  ;;  %p130_p5 = por %p129_p4, %p128_p3 }
  0x2d   :  { %v48_v11 = vmul.f32 %v47_v5, %v45_v8  ;;  %p131_p6 = pnand %p130_p5, %p124_p2 }
  0x33   :  { %v78_v6 = vpop.eup %77 }
  0x34   :  { %v42_v9 = vmul.f32 0.6931472, %v78_v6 }
  0x36   :  { %v43_v10 = vmax.f32 %v42_v9, -100.0 }
  0x38   :  { %v44_v12 = vsub.f32 0.0, %v43_v10 }
  0x3a   :  { %v49_v13 = vmul.f32 %v48_v11, %v44_v12 }
  0x3c   :  { %v50_v14 = vrot.slane %v49_v13, 4 }
  0x3e   :  { %v51_v15 = vadd.f32 %v50_v14, %v49_v13 }
  0x40   :  { %v52_v16 = vrot.slane %v51_v15, 2 }
  0x42   :  { %v53_v17 = vadd.f32 %v52_v16, %v51_v15 }
  0x44   :  { %v54_v18 = vrot.slane %v53_v17, 1 }
  0x46   :  { %v55_v19 = vadd.f32 %v54_v18, %v53_v17 }
  0x48   :  { %56 = vst [vmem:[#allocation7] sm:$0x1] %v55_v19 }
  0x49   :  { %134 = shalt.err (!%p131_p6)
}
  0x4a   :  { %s135_s9 = scalar_lea.hbm %s208_s2, 16 }
  0x4b   :  { %p136_p7 = scmp.ne.s32.totalorder %s208_s2, %s135_s9  ;;  %p139_p8 = scmp.lt.u32.totalorder %s135_s9, %s208_s2 }
  0x4d   :  { %p141_p9 = pnand %p139_p8, %p136_p7 }
  0x4f   :  { %144 = shalt.err (!%p141_p9)
}
  0x50   :  { %66 = dma.vmem_to_hbm [thread:$0]  %s64_s4, 16, %s208_s2, [#allocation4]  }
  0x51   :  { %149 = dma.done.wait [#allocation4], 16  }
  0x52   :  { %150 = vsyncadd [#allocation4], 4294967280 }
  0x53   :  { %70 = vsyncpa [#allocation3], 1 }
  0x54   :  { %71 = vsyncpa [#allocation6], 1 }
  0x55   :  { %72 = vsyncpa [#allocation4], 1 }

</bundles_post_ra>
